<compile_context>
chip_gen: v7x
topology: tpu7x:2x2x1
jax: 0.10.0
libtpu: 0.0.40
codegen_flags: <defaults>
</compile_context>

<pallas_src>
import math

import jax
import jax.numpy as jnp
from jax.experimental import pallas as pl
from jax.experimental.pallas import tpu as pltpu


def _round_up(v, m):
    return (v + m - 1) // m * m


def _penc_kernel(tx_ref, tyz_ref, o_ref):
    """One grid step = (channel block, spatial block); writes a (tc, X, tn) slab."""
    tx = tx_ref[...]                       # (tc, X)   f32
    tyz = tyz_ref[...]                     # (tc, tn)  f32
    # Exactly one of the two terms is non-zero per channel -> the add selects it.
    o_ref[...] = (tx[:, :, None] + tyz[:, None, :]).astype(o_ref.dtype)


def positional_encoding_permute_3d(x):
    """Pallas equivalent of PositionalEncodingPermute3D(C)(x) for x of shape (B, C, X, Y, Z)."""
    B, C, X, Y, Z = x.shape
    N = Y * Z
    itemsize = jnp.dtype(x.dtype).itemsize
    sub = max(8, 32 // max(itemsize, 1))   # sublane packing multiple for the output dtype

    # --- same parameter math as PositionalEncoding3D.__init__ ---
    channels = int(math.ceil(C / 6) * 2)
    if channels % 2:
        channels += 1
    inv_freq = 1.0 / (10000.0 ** (jnp.arange(0, channels, 2, dtype=jnp.float32) / channels))

    def axis_emb(L):
        # (L, channels): interleaved [sin, cos, sin, cos, ...] exactly like get_emb()
        sin_inp = jnp.arange(L, dtype=jnp.float32)[:, None] * inv_freq[None, :]
        return jnp.stack([jnp.sin(sin_inp), jnp.cos(sin_inp)], axis=-1).reshape(L, channels)

    ex, ey, ez = axis_emb(X), axis_emb(Y), axis_emb(Z)           # tiny tables (few KiB)

    c_idx = jnp.arange(C)
    band = c_idx // channels               # 0 -> varies along X, 1 -> Y, 2 -> Z
    local = c_idx % channels               # column inside that band's embedding
    tx = jnp.where((band == 0)[:, None], ex[:, local].T, 0.0)   # (C, X)
    ty = jnp.where((band == 1)[:, None], ey[:, local].T, 0.0)   # (C, Y)
    tz = jnp.where((band == 2)[:, None], ez[:, local].T, 0.0)   # (C, Z)
    tyz = (ty[:, :, None] + tz[:, None, :]).reshape(C, N)       # (C, Y*Z)

    # --- generation-aware VMEM budget ---
    try:
        physical_vmem = int(pltpu.get_tpu_info().vmem_capacity_bytes)
    except Exception:                                            # noqa: BLE001
        physical_vmem = 64 * 1024 * 1024                         # v7x-safe default
    vmem_limit = min(max(physical_vmem // 2, 32 * 1024 * 1024), 64 * 1024 * 1024)
    # Output block + the two tiny table blocks are each double-buffered.
    block_budget = min(16 * 1024 * 1024, vmem_limit // 2 - 1 * 1024 * 1024)

    def blk_bytes(tc_, tn_):
        # padded VMEM footprint of one output block + its table blocks (single buffer)
        out_b = tc_ * _round_up(X, sub) * _round_up(tn_, 128) * itemsize
        tx_b = _round_up(tc_, 8) * _round_up(X, 128) * 4
        tyz_b = _round_up(tc_, 8) * _round_up(tn_, 128) * 4
        return out_b + tx_b + tyz_b

    # --- spatial (lane) tiling: full N if it fits, otherwise multiples of 128 ---
    tn = N
    min_tc = min(C, 8)
    if blk_bytes(min_tc, tn) > block_budget:
        tn = _round_up(N, 128)
        while tn > 128 and blk_bytes(min_tc, tn) > block_budget:
            tn -= 128
        tn = max(128, tn)
    # TODO(synk): for extremely large X, additionally tile X (in multiples of 128 so the
    # tile stays legal for both the tx lane dim and the output sublane dim).

    # --- channel tiling: biggest multiple of 8 (or full C) that fits the budget ---
    if C <= 8 or blk_bytes(C, tn) <= block_budget:
        tc = C
    else:
        per_ch = max(1, blk_bytes(8, tn) // 8)
        tc = max(8, min(C, block_budget // per_ch) // 8 * 8)
        while tc > 8 and blk_bytes(tc, tn) > block_budget:
            tc -= 8

    # --- guarantee >=2 parallel grid steps when the problem allows (v7x has 2 TCs) ---
    cb, nb = pl.cdiv(C, tc), pl.cdiv(N, tn)
    if cb * nb == 1:
        if C > 8:
            tc = max(8, _round_up((C + 1) // 2, 8))
        elif N > 128:
            tn = max(128, _round_up((N + 1) // 2, 128))
        cb, nb = pl.cdiv(C, tc), pl.cdiv(N, tn)

    out_elems = C * X * N
    cost = pl.CostEstimate(
        flops=out_elems,                       # one add per (unique) output element
        transcendentals=0,
        bytes_accessed=out_elems * itemsize + C * (X + N) * 4,
    )

    penc = pl.pallas_call(
        _penc_kernel,
        out_shape=jax.ShapeDtypeStruct((C, X, N), x.dtype),
        grid=(cb, nb),                         # inner axis nb -> tx block never re-fetched
        in_specs=[
            pl.BlockSpec((tc, X), lambda c, n: (c, 0)),
            pl.BlockSpec((tc, tn), lambda c, n: (c, n)),
        ],
        out_specs=pl.BlockSpec((tc, X, tn), lambda c, n: (c, 0, n)),
        compiler_params=pltpu.CompilerParams(
            dimension_semantics=("parallel", "parallel"),
            vmem_limit_bytes=vmem_limit,
        ),
        cost_estimate=cost,
    )(tx, tyz)

    # The encoding is batch-independent: replicate across batch outside the kernel
    # (XLA broadcast; fuses into consumers under jit) and reshape back to 5-D for free.
    # TODO(synk): when X % sub != 0 the X-in-sublane layout leaves partially filled vregs;
    # folding X into the channel axis (output as (C*X, N)) would give full-sublane stores.
    return jnp.broadcast_to(penc[None], (B, C, X, N)).reshape(B, C, X, Y, Z)


def _reference(x):
    """Pure-JAX port of the PyTorch module, for verification."""
    B, C, X, Y, Z = x.shape
    channels = int(math.ceil(C / 6) * 2)
    if channels % 2:
        channels += 1
    inv_freq = 1.0 / (10000.0 ** (jnp.arange(0, channels, 2, dtype=jnp.float32) / channels))

    def get_emb(sin_inp):
        emb = jnp.stack([jnp.sin(sin_inp), jnp.cos(sin_inp)], axis=-1)
        return emb.reshape(sin_inp.shape[0], -1)

    emb_x = get_emb(jnp.arange(X, dtype=jnp.float32)[:, None] * inv_freq[None, :])
    emb_y = get_emb(jnp.arange(Y, dtype=jnp.float32)[:, None] * inv_freq[None, :])
    emb_z = get_emb(jnp.arange(Z, dtype=jnp.float32)[:, None] * inv_freq[None, :])

    emb = jnp.concatenate(
        [
            jnp.broadcast_to(emb_x[:, None, None, :], (X, Y, Z, channels)),
            jnp.broadcast_to(emb_y[None, :, None, :], (X, Y, Z, channels)),
            jnp.broadcast_to(emb_z[None, None, :, :], (X, Y, Z, channels)),
        ],
        axis=-1,
    ).astype(x.dtype)

    enc = jnp.broadcast_to(emb[None, :, :, :, :C], (B, X, Y, Z, C))
    return jnp.transpose(enc, (0, 4, 1, 2, 3))


if __name__ == "__main__":
    key = jax.random.PRNGKey(0)
    B, C, X, Y, Z = 2, 12, 8, 8, 16          # Y*Z = 128 lane-dense, X = 8 sublane-full
    x = jax.random.normal(key, (B, C, X, Y, Z), dtype=jnp.float32)

    out = jax.block_until_ready(positional_encoding_permute_3d(x))
    ref = jax.block_until_ready(_reference(x))

    assert out.shape == (B, C, X, Y, Z), out.shape
    assert out.dtype == x.dtype, out.dtype
    assert jnp.allclose(out, ref, atol=1e-5, rtol=1e-5), float(jnp.max(jnp.abs(out - ref)))
    print("KERNEL_OK")
</pallas_src>

<mosaic_0001>
module attributes {stable_mosaic.version = 11 : i64} {
  func.func @_penc_kernel(%arg0: i32, %arg1: i32, %arg2: memref<8x8xf32, #tpu.memory_space<vmem>>, %arg3: memref<8x128xf32, #tpu.memory_space<vmem>>, %arg4: memref<8x8x128xf32, #tpu.memory_space<vmem>>) attributes {dimension_semantics = [#tpu.dimension_semantics<parallel>, #tpu.dimension_semantics<parallel>], iteration_bounds = array<i64: 2, 1>, scalar_prefetch = 0 : i64, scratch_operands = 0 : i64, tpu.core_type = #tpu.core_type<tc>, window_params = [{transform_indices = @transform_0, window_bounds = array<i64: 8, 8>}, {transform_indices = @transform_1, window_bounds = array<i64: 8, 128>}, {transform_indices = @transform_2, window_bounds = array<i64: 8, 8, 128>}]} {
    %c0 = arith.constant 0 : index
    %c0_0 = arith.constant 0 : index
    %0 = vector.load %arg2[%c0, %c0_0] : memref<8x8xf32, #tpu.memory_space<vmem>>, vector<8x8xf32>
    %c0_1 = arith.constant 0 : index
    %c0_2 = arith.constant 0 : index
    %1 = vector.load %arg3[%c0_1, %c0_2] : memref<8x128xf32, #tpu.memory_space<vmem>>, vector<8x128xf32>
    %2 = vector.shape_cast %0 : vector<8x8xf32> to vector<8x8x1xf32>
    %3 = vector.shape_cast %1 : vector<8x128xf32> to vector<8x1x128xf32>
    %4 = vector.broadcast %2 : vector<8x8x1xf32> to vector<8x8x128xf32>
    %5 = vector.broadcast %3 : vector<8x1x128xf32> to vector<8x8x128xf32>
    %6 = arith.addf %4, %5 : vector<8x8x128xf32>
    %c0_3 = arith.constant 0 : index
    %c0_4 = arith.constant 0 : index
    %c0_5 = arith.constant 0 : index
    %7 = vector.load %arg4[%c0_3, %c0_4, %c0_5] : memref<8x8x128xf32, #tpu.memory_space<vmem>>, vector<8x8x128xf32>
    tpu.vector_store %arg4[%c0_3, %c0_4, %c0_5], %6 {strides = array<i32>} : memref<8x8x128xf32, #tpu.memory_space<vmem>>, vector<8x8x128xf32>,
    return
  }
  func.func @transform_0(%arg0: i32, %arg1: i32) -> (i32, i32) {
    %c0_i32 = arith.constant 0 : i32
    %c0_i32_0 = arith.constant 0 : i32
    return %arg0, %c0_i32 : i32, i32
  }
  func.func @transform_1(%arg0: i32, %arg1: i32) -> (i32, i32) {
    %c0_i32 = arith.constant 0 : i32
    return %arg0, %arg1 : i32, i32
  }
  func.func @transform_2(%arg0: i32, %arg1: i32) -> (i32, i32, i32) {
    %c0_i32 = arith.constant 0 : i32
    %c0_i32_0 = arith.constant 0 : i32
    return %arg0, %c0_i32, %arg1 : i32, i32, i32
  }
}

</mosaic_0001>

<bundles_post_ra>
// kernel: tpu_custom_call.1
= control target key start
LH: loop header
LB: loop body
LE: loop exit
PB: predicated region body
PF: predicated region fallthrough
CT: control target
= control target key end

     0   :  { %7 = vsyncpa [#allocation3], 0  ;;  %s788_s0 = inlined_call_operand.vmem [shape: f32[12,8], index: 0, kind: input, shape index: {}]   ;;  %s789_s1 = inlined_call_operand.vmem [shape: f32[12,128], index: 1, kind: input, shape index: {}]   ;;  %s790_s2 = inlined_call_operand.hbm [shape: f32[12,8,128], index: 2, kind: output, shape index: {}]  }
   0x1   :  { %9 = vsyncpa [#allocation3 + $0x1], 0  ;;  %s633_s9 = smov 0   ;;  %s635_s10 = smov 0  }
   0x2   :  { %s637_s11 = smov 0   ;;  %s639_s12 = smov 0  }
   0x3   :  { %s641_s13 = smov 0   ;;  %s643_s14 = smov 0  }
   0x4 LB: > { %s458_s15 = sadd.s32 4294967295, %s612_s14   ;;  %s459_s16 = sadd.s32 4294967294, %s612_s14   ;;  %s612_s14 = sphi %s643_s14, %s15_s14   ;;  %s608_s13 = sphi %s641_s13, %s797_s13   ;;  %s604_s12 = sphi %s639_s12, %s796_s12   ;;  %s600_s11 = sphi %s637_s11, %s795_s11   ;;  %s596_s10 = sphi %s635_s10, %s794_s10   ;;  %s592_s9 = sphi %s633_s9, %s793_s9  }
   0x5   : > { %s27_s17 = sadd.s32 1, %s608_s13  ;;  %s90_s18 = sadd.s32 1, %s600_s11 }
   0x6   : > { %p29_p0 = scmp.ge.s32.totalorder %s27_s17, 2  ;;  %p100_p1 = scmp.ne.s32.totalorder %s600_s11, %s596_s10 }
   0x7   : > { %p101_p2 = scmp.eq.s32.totalorder %s458_s15, 1  ;;  %p106_p3 = scmp.ne.s32.totalorder %s596_s10, %s592_s9 }
   0x8   : > { %s799_s17 = smov (%p29_p0, %s27_s17), 0  ;;  %p107_p5 = scmp.eq.s32.totalorder %s459_s16, 1 }
   0x9   : > { %p673_p4 = por %p101_p2, %p100_p1  ;;  %s85_s20 = ssub.s32 %s608_s13, %s799_s17 }
   0xa   : > { %p462_p6 = scmp.ge.s32.totalorder %s612_s14, 1  ;;  %p88_p7 = scmp.eq.s32.totalorder %s85_s20, 0 }
   0xb   : > { %p680_p8 = por %p107_p5, %p106_p3  ;;  %p142_p9 = scmp.lt.s32.totalorder %s612_s14, 3 }
   0xc   : > { %s686_s22 = scalar_select %p88_p7, %s600_s11, %s90_s18  }
   0xd   : > { %p143_p10 = pnand %p462_p6, %p142_p9 }
   0xe   : > { %p170_p11 = scmp.lt.s32.totalorder (!%p143_p10), %s604_s12, 1  ;;  %v188_v0 = vlaneseq (!%p143_p10)  ;;  %s167_s23 = sand.u32 (!%p143_p10), 1, %s596_s10   ;;  %v614_v1 = vmov (!%p143_p10), 1966171168  }
   0xf   : > { %146 = sbr.rel (%p143_p10) target bundleno = 187 (0xbb), region = 28  ;;  %v247_v2 = vunpack.c.l.s4 (!%p143_p10), %v614_v1  ;;  %s463_s4 = sshll.u32 (!%p143_p10), %s167_s23, 6 }
  0x10   : > { %v189_v3 = vshrl.u32 (!%p143_p10), %v188_v0, 7  ;;  %s710_s5 = scalar_lea.vmem (!%p143_p10), [#allocation2], %s463_s4  ;;  %s722_s6 = scalar_lea.sflag (!%p143_p10), [#allocation3], %s167_s23 }
  0x11   : > { %v248_v4 = vunpack.c.0.s8 (!%p143_p10), %v247_v2 }
  0x12   : > { %v204_v5 = vsub.s32 (!%p143_p10), 2, %v189_v3  ;;  %v691_v6 = vsub.s32 (!%p143_p10), 0, %v189_v3  ;;  %v211_v7 = vsub.s32 (!%p143_p10), 3, %v189_v3  ;;  %v197_v8 = vsub.s32 (!%p143_p10), 1, %v189_v3 }
  0x13   : > { %v251_v11 = vsub.s32 (!%p143_p10), %v248_v4, %v189_v3  ;;  %v225_v15 = vsub.s32 (!%p143_p10), 5, %v189_v3  ;;  %v218_v16 = vsub.s32 (!%p143_p10), 4, %v189_v3  ;;  %v239_v25 = vsub.s32 (!%p143_p10), 7, %v189_v3 }
  0x14   : > { %v232_v26 = vsub.s32 (!%p143_p10), 6, %v189_v3 }
  0x16   : > { %s171_s24 = scalar_select %p170_p11, %s604_s12, 1 }
  0x17   : > { %s467_s7 = sshll.u32 (%p673_p4), %s604_s12, 3 }
  0x18   : > { %s464_s25 = sshll.u32 %s171_s24, 3  ;;  %s359_s8 = ssub.s32 (%p673_p4), 12, %s467_s7 }
  0x19   : > { %s173_s28 = scalar_lea.vmem %s788_s0, %s464_s25  ;;  %s180_s3 = scalar_lea.vmem %s789_s1, %s464_s25 }
  0x1a   : > { %v186_v9 = vld [vmem:[%s173_s28] sm:$0xff]  ;;  %p360_p12 = scmp.lt.s32.totalorder (%p673_p4), %s359_s8, 8 }
  0x1b   : > { %v187_v10 = vld [vmem:[%s180_s3] sm:$0xff]  ;;  %v205_v12 = vrot.slane %v186_v9, %v204_v5  ;;  %v191_v13 = vrot.slane %v186_v9, %v691_v6  ;;  %v212_v14 = vrot.slane %v186_v9, %v211_v7  ;;  %v198_v17 = vrot.slane %v186_v9, %v197_v8 }
  0x1c   : > { %v252_v18 = vrot.slane %v187_v10, %v251_v11  ;;  %v245_v19 = vcombine.high %v187_v10, %v187_v10  ;;  %v226_v23 = vrot.slane %v186_v9, %v225_v15  ;;  %v219_v24 = vrot.slane %v186_v9, %v218_v16 }
  0x1d   : > { %207 = vbcast.lane.b32.xlu1 %v205_v12, 256  ;;  %193 = vbcast.lane.b32.xlu0 %v191_v13, 256  ;;  %v240_v38 = vrot.slane %v186_v9, %v239_v25  ;;  %v233_v39 = vrot.slane %v186_v9, %v232_v26 }
  0x1e   : > { %v268_v20 = vrot.slane %v252_v18, %v251_v11  ;;  %v260_v21 = vcombine.high %v252_v18, %v252_v18  ;;  %v259_v22 = vrot.slane %v245_v19, %v251_v11 }
  0x20   : > { %v290_v27 = vcombine.high %v268_v20, %v268_v20  ;;  %v297_v28 = vrot.slane %v268_v20, %v691_v6  ;;  %v282_v29 = vrot.slane %v260_v21, %v251_v11  ;;  %v261_v30 = vcombine.high %v259_v22, %v259_v22 }
  0x21   : > { %214 = vbcast.lane.b32.xlu1 %v212_v14, 256  ;;  %200 = vbcast.lane.b32.xlu0 %v198_v17, 256  ;;  %v275_v31 = vrot.slane %v259_v22, %v251_v11 }
  0x22   : > { %v305_v32 = vrot.slane %v290_v27, %v691_v6  ;;  %v292_v33 = vcombine.high %v282_v29, %v282_v29  ;;  %v301_v34 = vrot.slane %v282_v29, %v691_v6  ;;  %v289_v35 = vrot.slane %v261_v30, %v251_v11 }
  0x23   : > { %v313_v36 = vrot.slane %v275_v31, %v691_v6  ;;  %v291_v37 = vcombine.high %v275_v31, %v275_v31 }
  0x24   : > { %v309_v40 = vrot.slane %v292_v33, %v691_v6  ;;  %v317_v41 = vrot.slane %v289_v35, %v691_v6  ;;  %v293_v42 = vcombine.high %v289_v35, %v289_v35 }
  0x25   : > { %228 = vbcast.lane.b32.xlu1 %v226_v23, 256  ;;  %221 = vbcast.lane.b32.xlu0 %v219_v24, 256  ;;  %v321_v43 = vrot.slane %v291_v37, %v691_v6 }
  0x26   : > { %v325_v44 = vrot.slane %v293_v42, %v691_v6 }
  0x29   : > { %242 = vbcast.lane.b32.xlu1 %v240_v38, 256  ;;  %235 = vbcast.lane.b32.xlu0 %v233_v39, 256 }
  0x8f   : > { %v208_v45 = vpop.permute.xlu1 %207  ;;  %v194_v46 = vpop.permute.xlu0 %193 }
  0x90   : > { %v336_v47 = vadd.f32 %v305_v32, %v208_v45  ;;  %v334_v48 = vadd.f32 %v297_v28, %v194_v46 }
  0x92   : > { %344 = vst [vmem:[%s710_s5 + $0x10] sm:$0xff] %v336_v47  ;;  %342 = vst [vmem:[%s710_s5] sm:$0xff] %v334_v48 }
  0x93   : > { %v215_v49 = vpop.permute.xlu1 %214  ;;  %v201_v50 = vpop.permute.xlu0 %200 }
  0x94   : > { %v337_v51 = vadd.f32 %v309_v40, %v215_v49  ;;  %v335_v52 = vadd.f32 %v301_v34, %v201_v50 }
  0x96   : > { %345 = vst [vmem:[%s710_s5 + $0x18] sm:$0xff] %v337_v51  ;;  %343 = vst [vmem:[%s710_s5 + $0x8] sm:$0xff] %v335_v52 }
  0x97   : > { %v229_v53 = vpop.permute.xlu1 %228  ;;  %v222_v54 = vpop.permute.xlu0 %221 }
  0x98   : > { %v339_v55 = vadd.f32 %v317_v41, %v229_v53  ;;  %v338_v56 = vadd.f32 %v313_v36, %v222_v54  ;;  %357 = sbr.rel (!%p673_p4) target bundleno = 187 (0xbb), region = 32 }
  0x9a   : > { %347 = vst [vmem:[%s710_s5 + $0x28] sm:$0xff] %v339_v55  ;;  %346 = vst [vmem:[%s710_s5 + $0x20] sm:$0xff] %v338_v56 }
  0x9b   : > { %v243_v57 = vpop.permute.xlu1 %242  ;;  %v236_v58 = vpop.permute.xlu0 %235 }
  0x9c   : > { %v341_v59 = vadd.f32 %v325_v44, %v243_v57  ;;  %v340_v60 = vadd.f32 %v321_v43, %v236_v58 }
  0x9e   : > { %349 = vst [vmem:[%s710_s5 + $0x38] sm:$0xff] %v341_v59  ;;  %348 = vst [vmem:[%s710_s5 + $0x30] sm:$0xff] %v340_v60 }
  0x9f   : > { %s801_s8 = smov (!%p360_p12, %s359_s8), 8 }
  0xa0   : > { %s727_s15 = sshll.u32 %s801_s8, 7 }
  0xa1   : > { %s364_s16 = ssub.s32 1024, %s727_s15 }
  0xa2   : > { %365 = vsyncadd %s722_s6, %s364_s16  ;;  %p469_p13 = scmp.ne.s32.totalorder %s727_s15, 0  ;;  %s475_s18 = sshll.u32 %s604_s12, 10 }
  0xa3   : > { %s736_s23 = scalar_lea.hbm %s790_s2, %s475_s18  ;;  %s371_s24 = sshll.u32 %s710_s5, 4  ;;  %s739_s24 = int_to_ptr.vmem [resolvable:$true] %s371_s24 }
  0xa4   : > { %s534_s25 = scalar_lea.vmem %s739_s24, %s727_s15  ;;  %s615_s26 = smov [#allocation2]  }
  0xa5   : > { %p535_p0 = scmp.ne.s32.totalorder %s739_s24, %s534_s25  ;;  %s538_s27 = sshll.u32 %s615_s26, 4  ;;  %s539_s27 = int_to_ptr.vmem [resolvable:$false] %s538_s27 }
  0xa6   : > { %s540_s12 = scalar_lea.vmem %s539_s27, 2048  ;;  %p541_p3 = scmp.lt.s32.totalorder %s739_s24, %s539_s27 }
  0xa7   : > { %p536_p1 = pnand %p535_p0, %p469_p13  ;;  %p542_p4 = scmp.lt.s32.totalorder %s540_s12, %s534_s25 }
  0xa9   : > { %p537_p2 = pneg %p536_p1  ;;  %p543_p5 = por %p542_p4, %p541_p3 }
  0xab   : > { %p544_p6 = pnand %p543_p5, %p537_p2 }
  0xad   : > { %547 = shalt.err (!%p544_p6)
}
  0xae   : > { %s548_s28 = scalar_lea.hbm %s736_s23, %s727_s15  ;;  %s552_s3 = scalar_lea.hbm %s790_s2, 1536 }
  0xaf   : > { %p549_p7 = scmp.ne.s32.totalorder %s736_s23, %s548_s28  ;;  %p553_p11 = scmp.lt.u32.totalorder %s736_s23, %s790_s2 }
  0xb0   : > { %p554_p12 = scmp.lt.u32.totalorder %s552_s3, %s548_s28  ;;  %p556_p1 = scmp.lt.u32.totalorder %s548_s28, %s736_s23 }
  0xb1   : > { %p550_p9 = pnand %p549_p7, %p469_p13 }
  0xb2   : > { %p555_p0 = por %p554_p12, %p553_p11 }
  0xb3   : > { %p551_p10 = pneg %p550_p9 }
  0xb4   : > { %p557_p2 = por %p556_p1, %p555_p0 }
  0xb6   : > { %p558_p3 = pnand %p557_p2, %p551_p10 }
  0xb8   : > { %561 = shalt.err (!%p558_p3)
}
  0xb9   : > { %s616_s7 = smov 128   ;;  %s617_s8 = smov 8  }
  0xba   : > { %377 = dma.vmem_to_hbm [thread:$0]  (%p469_p13), %s739_s24, %s727_s15, %s736_s23, %s722_s6, %s616_s7, %s616_s7, %s617_s8  }
  0xbb PF: > { %p481_p4 = scmp.ge.s32.totalorder %s612_s14, 2  ;;  %s386_s16 = sand.u32 1, %s592_s9  }
  0xbc   : > { %s387_s18 = scalar_lea.sflag [#allocation3], %s386_s16 }
  0xbd   : > { %p478_p5 = pnand %p481_p4, %p680_p8 }
  0xbf   : > { %587 = dma.done.wait (!%p478_p5), %s387_s18, 1024  }
  0xc0   : > { %589 = vsyncadd (!%p478_p5), %s387_s18, 4294966272  ;;  %s15_s14 = sadd.s32 1, %s612_s14   ;;  %s793_s9 = smov %s596_s10 }
  0xc1   : > { %p12_p6 = scmp.ge.s32.totalorder %s15_s14, 4   ;;  %s794_s10 = smov %s600_s11 }
  0xc2   : > { %s795_s11 = smov %s686_s22  ;;  %s796_s12 = smov %s608_s13 }
  0xc3   : > { %s797_s13 = smov %s799_s17  ;;  %14 = sbr.rel (!%p12_p6) target bundleno = 4 (0x4), region = 66 }
  0xca   :  { %392 = vsyncpa [#allocation3], 1 }
  0xcb   :  { %394 = vsyncpa [#allocation3 + $0x1], 1 }

</bundles_post_ra>
